<compile_context>
chip_gen: v6e
topology: v6e:2x2x1
jax: 0.10.0
libtpu: 0.0.40
codegen_flags: <defaults>
</compile_context>

<pallas_src>
import jax
import jax.numpy as jnp
from jax import lax
from jax.experimental import pallas as pl
from jax.experimental.pallas import tpu as pltpu

# CartPole-v1: observation_space.shape[0] == 4, action_space.n == 2
NUM_INPUTS = 4
NUM_OUTPUTS = 2


def _round_up(n, m):
    return ((n + m - 1) // m) * m


def _linear_kernel(x_ref, w_ref, b_ref, o_ref):
    # x: [TB, IN], w: [OUT, IN], b: [1, OUT]  -> o: [TB, OUT]
    x = x_ref[...]
    w = w_ref[...]
    b = b_ref[...]
    # Contract the lane axis of both operands: no in-kernel transpose of W.
    acc = lax.dot_general(
        x, w,
        dimension_numbers=(((1,), (1,)), ((), ())),
        preferred_element_type=jnp.float32,
    )
    o_ref[...] = (acc + b).astype(o_ref.dtype)


def linear_forward(x, w, b, *, block_rows=1024):
    """x: [B, IN] f32, w: [OUT, IN] f32, b: [OUT] f32 -> [B, OUT] f32."""
    batch = x.shape[0]
    b2d = b.reshape(1, NUM_OUTPUTS)

    # Row tile: multiple of 8 (sublane tiling), capped at block_rows.
    tb = min(block_rows, _round_up(batch, 8))
    tb = _round_up(tb, 8)
    padded = _round_up(batch, tb)
    if padded != batch:
        x = jnp.pad(x, ((0, padded - batch), (0, 0)))
    grid = (padded // tb,)

    out = pl.pallas_call(
        _linear_kernel,
        out_shape=jax.ShapeDtypeStruct((padded, NUM_OUTPUTS), jnp.float32),
        grid=grid,
        in_specs=[
            # x: tiled along batch; lane dim (4) equals full array dim.
            pl.BlockSpec((tb, NUM_INPUTS), lambda i: (i, 0)),
            # W, b: full blocks, invariant across the grid (stay resident).
            pl.BlockSpec((NUM_OUTPUTS, NUM_INPUTS), lambda i: (0, 0)),
            pl.BlockSpec((1, NUM_OUTPUTS), lambda i: (0, 0)),
        ],
        out_specs=pl.BlockSpec((tb, NUM_OUTPUTS), lambda i: (i, 0)),
        compiler_params=pltpu.CompilerParams(
            dimension_semantics=("parallel",),  # shard batch across TCs on v7x
        ),
    )(x, w, b2d)

    return out[:batch] if padded != batch else out


def init_params(key):
    """Deterministic init mimicking nn.Linear's U(-1/sqrt(fan_in), 1/sqrt(fan_in))."""
    kw, kb = jax.random.split(key)
    bound = 1.0 / jnp.sqrt(jnp.float32(NUM_INPUTS))
    w = jax.random.uniform(
        kw, (NUM_OUTPUTS, NUM_INPUTS), jnp.float32, minval=-bound, maxval=bound
    )
    b = jax.random.uniform(
        kb, (NUM_OUTPUTS,), jnp.float32, minval=-bound, maxval=bound
    )
    return w, b


if __name__ == "__main__":
    key = jax.random.PRNGKey(0)
    k_x, k_x2, k_params = jax.random.split(key, 3)

    w, b = init_params(k_params)

    # Small batch of CartPole observations (single-tile path).
    batch = 8
    x = jax.random.normal(k_x, (batch, NUM_INPUTS), jnp.float32)
    out = jax.block_until_ready(linear_forward(x, w, b))
    ref = x @ w.T + b
    assert out.shape == (batch, NUM_OUTPUTS)
    assert jnp.allclose(out, ref, atol=1e-5, rtol=1e-5)

    # Larger, non-tile-aligned batch (exercises grid + padding path).
    batch2 = 200
    x2 = jax.random.normal(k_x2, (batch2, NUM_INPUTS), jnp.float32)
    out2 = jax.block_until_ready(linear_forward(x2, w, b, block_rows=64))
    ref2 = x2 @ w.T + b
    assert out2.shape == (batch2, NUM_OUTPUTS)
    assert jnp.allclose(out2, ref2, atol=1e-5, rtol=1e-5)

    print("KERNEL_OK")
</pallas_src>

<mosaic_0001>
module attributes {stable_mosaic.version = 11 : i64} {
  func.func @_linear_kernel(%arg0: i32, %arg1: memref<8x4xf32, #tpu.memory_space<vmem>>, %arg2: memref<2x4xf32, #tpu.memory_space<vmem>>, %arg3: memref<1x2xf32, #tpu.memory_space<vmem>>, %arg4: memref<8x2xf32, #tpu.memory_space<vmem>>) attributes {dimension_semantics = [#tpu.dimension_semantics<parallel>], iteration_bounds = array<i64: 1>, scalar_prefetch = 0 : i64, scratch_operands = 0 : i64, tpu.core_type = #tpu.core_type<tc>, window_params = [{transform_indices = @transform_0, window_bounds = array<i64: 8, 4>}, {pipeline_mode = #tpu.pipeline_mode<synchronous>, transform_indices = @transform_1, window_bounds = array<i64: 2, 4>}, {pipeline_mode = #tpu.pipeline_mode<synchronous>, transform_indices = @transform_2, window_bounds = array<i64: 1, 2>}, {transform_indices = @transform_3, window_bounds = array<i64: 8, 2>}]} {
    %c0 = arith.constant 0 : index
    %c0_0 = arith.constant 0 : index
    %0 = vector.load %arg1[%c0, %c0_0] : memref<8x4xf32, #tpu.memory_space<vmem>>, vector<8x4xf32>
    %c0_1 = arith.constant 0 : index
    %c0_2 = arith.constant 0 : index
    %1 = vector.load %arg2[%c0_1, %c0_2] : memref<2x4xf32, #tpu.memory_space<vmem>>, vector<2x4xf32>
    %c0_3 = arith.constant 0 : index
    %c0_4 = arith.constant 0 : index
    %2 = vector.load %arg3[%c0_3, %c0_4] : memref<1x2xf32, #tpu.memory_space<vmem>>, vector<1x2xf32>
    %cst = arith.constant dense<0.000000e+00> : vector<8x2xf32>
    %3 = tpu.matmul %0, %1, %cst {dimension_numbers = #tpu.dot_dimension_numbers<[1], [1], [0], [0], [0, 0, 1, 0], [], []>} : vector<8x4xf32>, vector<2x4xf32>, vector<8x2xf32> -> vector<8x2xf32>
    %4 = vector.broadcast %2 : vector<1x2xf32> to vector<8x2xf32>
    %5 = arith.addf %3, %4 : vector<8x2xf32>
    %c0_5 = arith.constant 0 : index
    %c0_6 = arith.constant 0 : index
    %6 = vector.load %arg4[%c0_5, %c0_6] : memref<8x2xf32, #tpu.memory_space<vmem>>, vector<8x2xf32>
    tpu.vector_store %arg4[%c0_5, %c0_6], %5 {strides = array<i32>} : memref<8x2xf32, #tpu.memory_space<vmem>>, vector<8x2xf32>,
    return
  }
  func.func @transform_0(%arg0: i32) -> (i32, i32) {
    %c0_i32 = arith.constant 0 : i32
    %c0_i32_0 = arith.constant 0 : i32
    return %arg0, %c0_i32 : i32, i32
  }
  func.func @transform_1(%arg0: i32) -> (i32, i32) {
    %c0_i32 = arith.constant 0 : i32
    %c0_i32_0 = arith.constant 0 : i32
    %c0_i32_1 = arith.constant 0 : i32
    return %c0_i32, %c0_i32_0 : i32, i32
  }
  func.func @transform_2(%arg0: i32) -> (i32, i32) {
    %c0_i32 = arith.constant 0 : i32
    %c0_i32_0 = arith.constant 0 : i32
    %c0_i32_1 = arith.constant 0 : i32
    return %c0_i32, %c0_i32_0 : i32, i32
  }
  func.func @transform_3(%arg0: i32) -> (i32, i32) {
    %c0_i32 = arith.constant 0 : i32
    %c0_i32_0 = arith.constant 0 : i32
    return %arg0, %c0_i32 : i32, i32
  }
}

</mosaic_0001>

<bundles_post_ra>
// kernel: tpu_custom_call.1
= control target key start
LH: loop header
LB: loop body
LE: loop exit
PB: predicated region body
PF: predicated region fallthrough
CT: control target
= control target key end

     0   :  { %vm23_vm0 = vcmask 31744   ;;  %v118_v0 = vmov 0.0   ;;  %vm119_vm1 = vmmov 0   ;;  %vm100_vm2 = vcmask 15360   ;;  %s152_s1 = inlined_call_operand.vmem [shape: f32[2,4], index: 1, kind: input, shape index: {}]   ;;  %s153_s0 = inlined_call_operand.vmem [shape: f32[8,4], index: 0, kind: input, shape index: {}]   ;;  %s154_s2 = inlined_call_operand.vmem [shape: f32[1,2], index: 2, kind: input, shape index: {}]   ;;  %s155_s3 = inlined_call_operand.vmem [shape: f32[8,2], index: 3, kind: output, shape index: {}]  }
   0x1   :  { %111 = vmatprep.subr.mxu0 %v118_v0  ;;  %v15_v1 = vld [vmem:[%s152_s1] sm:$0x3]  ;;  %113 = vmatprep.mubr.msk.f32.mxu0 %vm119_vm1, %v118_v0 }
   0x2   :  { %112 = vmatpush3.xpose.msk.msra.mxu0 %vm23_vm0, %v15_v1  ;;  %v14_v2 = vld [vmem:[%s153_s0] sm:$0xff] }
   0x3   :  { %v106_v3 = vld [vmem:[%s154_s2] ss:$0 sm:$0xff] }
   0x5   :  { %114 = vmatmul.mubr.msk.f32.vlgmr.msra.gmra.mxu0 %vm23_vm0, %v14_v2 }
  0xc5   :  { %v96_v4 = vpop.f32.mrf.mxu0 }
  0xc6   :  { %v97_v5 = vadd.f32 %v106_v3, %v96_v4 }
  0xc7   :  { %v115_v6 = vpop.f32.mrf.mxu0 }
  0xc8   :  { %101 = vst.msk [vmem:[%s155_s3] sm:$0xff] %vm100_vm2, %v97_v5 }

</bundles_post_ra>
